<compile_context>
chip_gen: v5e
topology: v5e:2x2
jax: 0.10.0
libtpu: 0.0.40
codegen_flags: <defaults>
</compile_context>

<pallas_src>
import jax
import jax.numpy as jnp
from jax.experimental import pallas as pl
from jax.experimental.pallas import tpu as pltpu

NUM_EMBEDDINGS = 21  # ZINC atom vocabulary size
NUM_ADDED = 2
_LANE = 128
_VMEM_BUDGET_BYTES = 40 * 1024 * 1024  # conservative across v5e/v6e/v7x


def _round_up(a, m):
    return ((a + m - 1) // m) * m


def _ego_nets_plus_kernel(x_ref, rhs_ref, out_ref):
    # x_ref:   (TN, 3)         int32  [flag0, flag1, atom_idx]
    # rhs_ref: (23, OUT_PAD)   f32    blockdiag(I2, table), VMEM-resident
    # out_ref: (TN, OUT_PAD)   f32    lane-dense (OUT_PAD % 128 == 0)
    x = x_ref[...]
    tn = x.shape[0]
    k = NUM_ADDED + NUM_EMBEDDINGS  # 23

    idx = x[:, NUM_ADDED:NUM_ADDED + 1]                       # (TN, 1) int32
    p0 = x[:, 0:1].astype(jnp.float32)                        # (TN, 1)
    p1 = x[:, 1:2].astype(jnp.float32)                        # (TN, 1)

    lane = jax.lax.broadcasted_iota(jnp.int32, (tn, k), 1)    # lanes 0..22
    # one_hot is zero on lanes 0,1 for in-range idx (>= 0).
    one_hot = (lane - NUM_ADDED == idx).astype(jnp.float32)   # (TN, 23)
    # lanes 0,1 <- prefix values; lanes 2..22 <- one-hot.  No concatenate.
    lhs = jnp.where(lane == 0, p0, jnp.where(lane == 1, p1, one_hot))

    out_ref[...] = jnp.dot(lhs, rhs_ref[...],
                           preferred_element_type=jnp.float32)


def _embed_kernel(idx_ref, table_ref, out_ref):
    # idx_ref: (TN, 1) int32 ; table_ref: (21, E_PAD) f32 ; out_ref: (TN, E_PAD)
    idx = idx_ref[...]
    tn = idx.shape[0]
    lane = jax.lax.broadcasted_iota(jnp.int32, (tn, NUM_EMBEDDINGS), 1)
    one_hot = (lane == idx).astype(jnp.float32)
    out_ref[...] = jnp.dot(one_hot, table_ref[...],
                           preferred_element_type=jnp.float32)


def _choose_tile(n, tile_n, out_row_bytes):
    """Pick the node tile: amortize step overhead but respect the VMEM budget.

    Input tile (tn, <=3) int32 lane-pads to 128 lanes in VMEM -> _LANE*4 B/row.
    Double-buffered footprint ~= 2 * tn * (in_row + out_row) bytes.
    """
    in_row_bytes = _LANE * 4
    tn = min(_round_up(tile_n, 8), _round_up(n, 8))
    tn = min(tn, 8192)  # hard cap per review (v7x VMEM headroom)
    while tn > 512 and 2 * tn * (in_row_bytes + out_row_bytes) > _VMEM_BUDGET_BYTES:
        tn = max(512, _round_up(tn // 2, 8))
    return tn


def _compiler_params(core_parallel, vmem_bytes):
    sem = (pltpu.CORE_PARALLEL,) if core_parallel else ("parallel",)
    return pltpu.CompilerParams(dimension_semantics=sem,
                                vmem_limit_bytes=int(vmem_bytes))


def zinc_atom_encoder(x, table, policy="ego_nets_plus", tile_n=4096,
                      core_parallel=False):
    """x: [N, 3] int (ego_nets_plus) or [N]/[N,1] int (default);
    table: [21, emb_dim] float32 embedding weights.
    core_parallel=True requests CORE_PARALLEL grid sharding (v7x, 2 TCs)."""
    table = jnp.asarray(table, jnp.float32)
    emb_dim = table.shape[1]

    if policy == "ego_nets_plus":
        x = jnp.asarray(x, jnp.int32)
        assert x.ndim == 2 and x.shape[1] == NUM_ADDED + 1, "expected x of shape [N, 3]"
        n = x.shape[0]
        out_w = NUM_ADDED + emb_dim
        out_w_pad = _round_up(out_w, _LANE)        # lane-dense stores for any emb_dim
        k = NUM_ADDED + NUM_EMBEDDINGS             # 23

        # Augmented rhs = blockdiag(I2, table) padded to a 128-multiple width:
        # folds the hstack into the matmul and keeps output stores unmasked.
        rhs = jnp.zeros((k, out_w_pad), jnp.float32)
        rhs = rhs.at[:NUM_ADDED, :NUM_ADDED].set(jnp.eye(NUM_ADDED, dtype=jnp.float32))
        rhs = rhs.at[NUM_ADDED:, NUM_ADDED:out_w].set(table)

        tn = _choose_tile(n, tile_n, out_w_pad * 4)
        grid = (pl.cdiv(n, tn),)
        vmem_bytes = (2 * tn * (_LANE * 4 + out_w_pad * 4)
                      + 2 * k * out_w_pad * 4 + (2 << 20))
        cost = pl.CostEstimate(
            flops=2 * n * k * out_w_pad,
            transcendentals=0,
            bytes_accessed=n * (out_w_pad * 4 + (NUM_ADDED + 1) * 4)
                           + k * out_w_pad * 4)

        out = pl.pallas_call(
            _ego_nets_plus_kernel,
            out_shape=jax.ShapeDtypeStruct((n, out_w_pad), jnp.float32),
            grid=grid,
            in_specs=[
                pl.BlockSpec((tn, NUM_ADDED + 1), lambda i: (i, 0)),  # x tile
                pl.BlockSpec((k, out_w_pad), lambda i: (0, 0)),       # table: resident
            ],
            out_specs=pl.BlockSpec((tn, out_w_pad), lambda i: (i, 0)),
            compiler_params=_compiler_params(core_parallel, vmem_bytes),
            cost_estimate=cost,
        )(x, rhs)
        # TODO(synk): the wrapper slice below adds one extra (strided) HBM pass
        # when 2+emb_dim is not a 128 multiple; it buys unmasked in-kernel stores.
        return out if out_w_pad == out_w else out[:, :out_w]

    else:
        idx = jnp.asarray(x, jnp.int32).reshape(-1, 1)  # == x.squeeze() indices
        n = idx.shape[0]
        emb_pad = _round_up(emb_dim, _LANE)
        table_pad = table if emb_pad == emb_dim else jnp.pad(
            table, ((0, 0), (0, emb_pad - emb_dim)))

        tn = _choose_tile(n, tile_n, emb_pad * 4)
        grid = (pl.cdiv(n, tn),)
        vmem_bytes = (2 * tn * (_LANE * 4 + emb_pad * 4)
                      + 2 * NUM_EMBEDDINGS * emb_pad * 4 + (2 << 20))
        cost = pl.CostEstimate(
            flops=2 * n * NUM_EMBEDDINGS * emb_pad,
            transcendentals=0,
            bytes_accessed=n * (emb_pad * 4 + 4) + NUM_EMBEDDINGS * emb_pad * 4)

        out = pl.pallas_call(
            _embed_kernel,
            out_shape=jax.ShapeDtypeStruct((n, emb_pad), jnp.float32),
            grid=grid,
            in_specs=[
                pl.BlockSpec((tn, 1), lambda i: (i, 0)),                   # idx tile
                pl.BlockSpec((NUM_EMBEDDINGS, emb_pad), lambda i: (0, 0)), # resident
            ],
            out_specs=pl.BlockSpec((tn, emb_pad), lambda i: (i, 0)),
            compiler_params=_compiler_params(core_parallel, vmem_bytes),
            cost_estimate=cost,
        )(idx, table_pad)
        return out if emb_pad == emb_dim else out[:, :emb_dim]


if __name__ == "__main__":
    key = jax.random.PRNGKey(0)
    k_tab, k_tab2, k_pref, k_idx = jax.random.split(key, 4)

    N = 64
    EMB_DIM = 126        # 2 + 126 = 128 -> natively lane-dense ego output
    EMB_DIM_ODD = 60     # exercises the padded (lane-dense kernel + slice) path

    # torch.nn.Embedding(21, emb_dim) default init ~ N(0, 1), deterministic here.
    table = jax.random.normal(k_tab, (NUM_EMBEDDINGS, EMB_DIM), dtype=jnp.float32)
    table_odd = jax.random.normal(k_tab2, (NUM_EMBEDDINGS, EMB_DIM_ODD), dtype=jnp.float32)

    # x: [N, 3] int32 — two "added" flag columns + one atom-type index column.
    prefix_cols = jax.random.randint(k_pref, (N, NUM_ADDED), 0, 2, dtype=jnp.int32)
    atom_idx = jax.random.randint(k_idx, (N, 1), 0, NUM_EMBEDDINGS, dtype=jnp.int32)
    x = jnp.concatenate([prefix_cols, atom_idx], axis=1)

    # --- ego_nets_plus, lane-aligned emb_dim ---
    out = jax.block_until_ready(zinc_atom_encoder(x, table, policy="ego_nets_plus"))
    ref = jnp.concatenate(
        [x[:, :NUM_ADDED].astype(jnp.float32), table[x[:, NUM_ADDED:].squeeze()]],
        axis=1,
    )
    assert out.shape == (N, NUM_ADDED + EMB_DIM)
    assert jnp.allclose(out, ref, atol=1e-6), "ego_nets_plus mismatch vs reference"

    # --- ego_nets_plus, non-aligned emb_dim (padded kernel output + slice) ---
    out_odd = jax.block_until_ready(
        zinc_atom_encoder(x, table_odd, policy="ego_nets_plus"))
    ref_odd = jnp.concatenate(
        [x[:, :NUM_ADDED].astype(jnp.float32), table_odd[x[:, NUM_ADDED:].squeeze()]],
        axis=1,
    )
    assert out_odd.shape == (N, NUM_ADDED + EMB_DIM_ODD)
    assert jnp.allclose(out_odd, ref_odd, atol=1e-6), "ego_nets_plus (padded) mismatch"

    # --- default policy (bare index column) ---
    out2 = jax.block_until_ready(zinc_atom_encoder(atom_idx, table, policy="default"))
    assert out2.shape == (N, EMB_DIM)
    assert jnp.allclose(out2, table[atom_idx.squeeze()], atol=1e-6), "default mismatch"

    out3 = jax.block_until_ready(
        zinc_atom_encoder(atom_idx, table_odd, policy="default"))
    assert out3.shape == (N, EMB_DIM_ODD)
    assert jnp.allclose(out3, table_odd[atom_idx.squeeze()], atol=1e-6), \
        "default (padded) mismatch"

    print("KERNEL_OK")
</pallas_src>

<mosaic_0001>
module attributes {stable_mosaic.version = 11 : i64} {
  func.func @_ego_nets_plus_kernel(%arg0: i32, %arg1: memref<64x3xi32, #tpu.memory_space<vmem>>, %arg2: memref<23x128xf32, #tpu.memory_space<vmem>>, %arg3: memref<64x128xf32, #tpu.memory_space<vmem>>) attributes {dimension_semantics = [#tpu.dimension_semantics<parallel>], iteration_bounds = array<i64: 1>, scalar_prefetch = 0 : i64, scratch_operands = 0 : i64, tpu.core_type = #tpu.core_type<tc>, window_params = [{transform_indices = @transform_0, window_bounds = array<i64: 64, 3>}, {pipeline_mode = #tpu.pipeline_mode<synchronous>, transform_indices = @transform_1, window_bounds = array<i64: 23, 128>}, {transform_indices = @transform_2, window_bounds = array<i64: 64, 128>}]} {
    %c0 = arith.constant 0 : index
    %c0_0 = arith.constant 0 : index
    %0 = vector.load %arg1[%c0, %c0_0] : memref<64x3xi32, #tpu.memory_space<vmem>>, vector<64x3xi32>
    %1 = vector.extract_strided_slice %0 {offsets = [0, 2], sizes = [64, 1], strides = [1, 1]} : vector<64x3xi32> to vector<64x1xi32>
    %2 = vector.extract_strided_slice %0 {offsets = [0, 0], sizes = [64, 1], strides = [1, 1]} : vector<64x3xi32> to vector<64x1xi32>
    %3 = arith.sitofp %2 : vector<64x1xi32> to vector<64x1xf32>
    %4 = vector.extract_strided_slice %0 {offsets = [0, 1], sizes = [64, 1], strides = [1, 1]} : vector<64x3xi32> to vector<64x1xi32>
    %5 = arith.sitofp %4 : vector<64x1xi32> to vector<64x1xf32>
    %6 = tpu.iota {dimensions = array<i32: 1>} : vector<64x23xi32>
    %c2_i32 = arith.constant 2 : i32
    %7 = vector.broadcast %c2_i32 : i32 to vector<64x23xi32>
    %8 = arith.subi %6, %7 : vector<64x23xi32>
    %9 = vector.broadcast %1 : vector<64x1xi32> to vector<64x23xi32>
    %10 = arith.cmpi eq, %8, %9 : vector<64x23xi32>
    %11 = arith.extui %10 : vector<64x23xi1> to vector<64x23xi32>
    %12 = arith.sitofp %11 : vector<64x23xi32> to vector<64x23xf32>
    %c0_i32 = arith.constant 0 : i32
    %13 = vector.broadcast %c0_i32 : i32 to vector<64x23xi32>
    %14 = arith.cmpi eq, %6, %13 : vector<64x23xi32>
    %c1_i32 = arith.constant 1 : i32
    %15 = vector.broadcast %c1_i32 : i32 to vector<64x23xi32>
    %16 = arith.cmpi eq, %6, %15 : vector<64x23xi32>
    %17 = vector.shape_cast %5 : vector<64x1xf32> to vector<64x1xf32>
    %18 = vector.broadcast %17 : vector<64x1xf32> to vector<64x23xf32>
    %19 = arith.select %16, %18, %12 : vector<64x23xi1>, vector<64x23xf32>
    %20 = vector.shape_cast %3 : vector<64x1xf32> to vector<64x1xf32>
    %21 = vector.broadcast %20 : vector<64x1xf32> to vector<64x23xf32>
    %22 = arith.select %14, %21, %19 : vector<64x23xi1>, vector<64x23xf32>
    %c0_1 = arith.constant 0 : index
    %c0_2 = arith.constant 0 : index
    %23 = vector.load %arg2[%c0_1, %c0_2] : memref<23x128xf32, #tpu.memory_space<vmem>>, vector<23x128xf32>
    %cst = arith.constant dense<0.000000e+00> : vector<64x128xf32>
    %24 = tpu.matmul %22, %23, %cst {dimension_numbers = #tpu.dot_dimension_numbers<[1], [0], [0], [1], [0, 0, 1, 1], [], []>} : vector<64x23xf32>, vector<23x128xf32>, vector<64x128xf32> -> vector<64x128xf32>
    %c0_3 = arith.constant 0 : index
    %c0_4 = arith.constant 0 : index
    %25 = vector.load %arg3[%c0_3, %c0_4] : memref<64x128xf32, #tpu.memory_space<vmem>>, vector<64x128xf32>
    tpu.vector_store %arg3[%c0_3, %c0_4], %24 {strides = array<i32>} : memref<64x128xf32, #tpu.memory_space<vmem>>, vector<64x128xf32>,
    return
  }
  func.func @transform_0(%arg0: i32) -> (i32, i32) {
    %c0_i32 = arith.constant 0 : i32
    %c0_i32_0 = arith.constant 0 : i32
    return %arg0, %c0_i32 : i32, i32
  }
  func.func @transform_1(%arg0: i32) -> (i32, i32) {
    %c0_i32 = arith.constant 0 : i32
    %c0_i32_0 = arith.constant 0 : i32
    %c0_i32_1 = arith.constant 0 : i32
    return %c0_i32, %c0_i32_0 : i32, i32
  }
  func.func @transform_2(%arg0: i32) -> (i32, i32) {
    %c0_i32 = arith.constant 0 : i32
    %c0_i32_0 = arith.constant 0 : i32
    return %arg0, %c0_i32 : i32, i32
  }
}

</mosaic_0001>

<bundles_post_ra>
// kernel: tpu_custom_call.1
= control target key start
LH: loop header
LB: loop body
LE: loop exit
PB: predicated region body
PF: predicated region fallthrough
CT: control target
= control target key end

     0   :  { %v346_v1 = vmov 2   ;;  %v347_v2 = vmov 1   ;;  %v348_v4 = vmov 0   ;;  %s449_s0 = inlined_call_operand.vmem [shape: s32[64,3], index: 0, kind: input, shape index: {}]   ;;  %s450_s1 = inlined_call_operand.vmem [shape: f32[23,128], index: 1, kind: input, shape index: {}]   ;;  %s451_s2 = inlined_call_operand.hbm [shape: f32[64,128], index: 2, kind: output, shape index: {}]  }
   0x1   :  { %v16_v0 = vld [vmem:[%s449_s0 + $0x20] sm:$0xff]  ;;  %302 = vset.pattern.permute.xlu0 %v346_v1  ;;  %303 = vset.pattern.permute.xlu1 %v347_v2 }
   0x2   :  { %v24_v3 = vcvt.s32.f32 %v16_v0  ;;  %44 = vperm.xlu0 %302, %v16_v0   ;;  %304 = vset.pattern.permute.xlu2 %v348_v4 }
   0x3   :  { %7 = vsyncpa [#allocation3], 0  ;;  %v18_v5 = vld [vmem:[%s449_s0 + $0x30] sm:$0xff]  ;;  %v12_v7 = vld [vmem:[%s449_s0] sm:$0xff]  ;;  %vm197_vm0 = vcmask 1046528   ;;  %v28_v24 = vlaneseq  ;;  %v349_v30 = vmov 0.0  }
   0x4   :  { %103 = vperm.xlu1 %303, %v24_v3   ;;  %146 = vperm.xlu2 %304, %v24_v3   ;;  %v26_v6 = vcvt.s32.f32 %v18_v5  ;;  %v14_v8 = vld [vmem:[%s449_s0 + $0x10] sm:$0xff]  ;;  %v17_v9 = vld [vmem:[%s449_s0 + $0x28] sm:$0xff]  ;;  %v19_v10 = vld [vmem:[%s449_s0 + $0x38] sm:$0xff]  ;;  %v20_v11 = vcvt.s32.f32 %v12_v7  ;;  %vm172_vm4 = vcmask 187392   ;;  %s256_s5 = sshll.u32 %s451_s2, 4  ;;  %s351_s6 = smov 128   ;;  %s257_s5 = int_to_ptr.hbm [resolvable:$true] %s256_s5 }
   0x5   :  { %v22_v12 = vcvt.s32.f32 %v14_v8  ;;  %v25_v13 = vcvt.s32.f32 %v17_v9  ;;  %v27_v14 = vcvt.s32.f32 %v19_v10  ;;  %v13_v15 = vld [vmem:[%s449_s0 + $0x8] sm:$0xff]  ;;  %v15_v17 = vld [vmem:[%s449_s0 + $0x18] sm:$0xff]  ;;  %v171_v19 = vld [vmem:[%s450_s1 + $0x10] sm:$0x7f]  ;;  %v401_v25 = vand.u32 127, %v28_v24  ;;  %s352_s7 = smov 8  }
   0x6   :  { %v21_v16 = vcvt.s32.f32 %v13_v15  ;;  %v23_v18 = vcvt.s32.f32 %v15_v17  ;;  %287 = vmatpush.msk.msra.mxu2 %vm197_vm0, %v171_v19  ;;  %288 = vmatpush.msk.msra.mxu3 %vm197_vm0, %v171_v19  ;;  %v170_v20 = vld [vmem:[%s450_s1 + $0x8] sm:$0xff]  ;;  %v169_v21 = vld [vmem:[%s450_s1] sm:$0xff]  ;;  %s350_s1 = smov [#allocation2]  }
   0x7   :  { %277 = vmatpush.msk.msra.mxu0 %vm197_vm0, %v171_v19  ;;  %286 = vmatpush.msk.msra.mxu1 %vm197_vm0, %v171_v19  ;;  %v268_v27 = vadd.s32 4294967294, %v401_v25  ;;  %vm80_vm1 = vcmp.eq.s32.totalorder %v401_v25, 1  ;;  %vm79_vm3 = vcmp.eq.s32.totalorder %v401_v25, 0  ;;  %s254_s30 = sshll.u32 %s350_s1, 4  ;;  %s255_s30 = int_to_ptr.vmem [resolvable:$true] %s254_s30 }
   0x8   :  { %290 = vmatpush.msra.mxu2 %v170_v20  ;;  %291 = vmatpush.msra.mxu3 %v170_v20 }
   0x9   :  { %215 = vmatpush.msra.mxu0 %v170_v20  ;;  %289 = vmatpush.msra.mxu1 %v170_v20 }
   0xa   :  { %50 = vperm.xlu0 %302, %v18_v5   ;;  %293 = vmatpush.msra.mxu2 %v169_v21 }
   0xb   :  { %294 = vmatpush.msra.mxu3 %v169_v21  ;;  %216 = vmatpush.msra.mxu0 %v169_v21 }
   0xc   :  { %113 = vperm.xlu1 %303, %v26_v6   ;;  %154 = vperm.xlu2 %304, %v26_v6  }
   0xd   :  { %292 = vmatpush.msra.mxu1 %v169_v21 }
  0x12   :  { %32 = vperm.xlu0 %302, %v12_v7  }
  0x14   :  { %305 = vset.pattern.permute.xlu1 %v346_v1  ;;  %306 = vset.pattern.permute.xlu2 %v346_v1 }
  0x15   :  { %38 = vperm.xlu1 %305, %v14_v8   ;;  %47 = vperm.xlu2 %306, %v17_v9  }
  0x1a   :  { %53 = vperm.xlu0 %302, %v19_v10  }
  0x1d   :  { %307 = vset.pattern.permute.xlu1 %v347_v2  ;;  %308 = vset.pattern.permute.xlu2 %v347_v2 }
  0x1e   :  { %83 = vperm.xlu1 %307, %v20_v11   ;;  %93 = vperm.xlu2 %308, %v22_v12  }
  0x22   :  { %309 = vset.pattern.permute.xlu0 %v348_v4 }
  0x23   :  { %130 = vperm.xlu0 %309, %v20_v11  }
  0x26   :  { %310 = vset.pattern.permute.xlu1 %v348_v4  ;;  %108 = vperm.xlu2 %308, %v25_v13  }
  0x27   :  { %138 = vperm.xlu1 %310, %v22_v12  }
  0x2b   :  { %158 = vperm.xlu0 %309, %v27_v14  }
  0x2e   :  { %312 = vset.pattern.permute.xlu2 %v348_v4 }
  0x2f   :  { %311 = vset.pattern.permute.xlu1 %v347_v2  ;;  %150 = vperm.xlu2 %312, %v25_v13  }
  0x30   :  { %118 = vperm.xlu1 %311, %v27_v14  }
  0x33   :  { %315 = vset.pattern.permute.xlu0 %v347_v2 }
  0x34   :  { %88 = vperm.xlu0 %315, %v21_v16  }
  0x37   :  { %314 = vset.pattern.permute.xlu2 %v346_v1 }
  0x38   :  { %313 = vset.pattern.permute.xlu1 %v346_v1  ;;  %41 = vperm.xlu2 %314, %v15_v17  }
  0x39   :  { %35 = vperm.xlu1 %313, %v13_v15  }
  0x3c   :  { %319 = vset.pattern.permute.xlu0 %v348_v4 }
  0x40   :  { %317 = vset.pattern.permute.xlu2 %v348_v4 }
  0x41   :  { %316 = vset.pattern.permute.xlu1 %v347_v2  ;;  %134 = vperm.xlu2 %317, %v21_v16  }
  0x42   :  { %98 = vperm.xlu1 %316, %v23_v18  }
  0x4a   :  { %318 = vset.pattern.permute.xlu1 %v348_v4 }
  0x4b   :  { %142 = vperm.xlu1 %318, %v23_v18  }
  0x5e   :  { %v147_v22 = vpop.permute.xlu2 %146 }
  0x66   :  { %v155_v23 = vpop.permute.xlu2 %154 }
  0x6f   :  { %v48_v26 = vpop.permute.xlu2 %47 }
  0x70   :  { %vm60_vm6 = vcmp.eq.s32.totalorder %v268_v27, %v48_v26 }
  0x71   :  { %v274_v41 = vsel %vm60_vm6, 1.0, %v349_v30 }
  0x74   :  { %v45_v28 = vpop.permute.xlu0 %44 }
  0x75   :  { %vm59_vm2 = vcmp.eq.s32.totalorder %v268_v27, %v45_v28 }
  0x76   :  { %v104_v29 = vpop.permute.xlu1 %103  ;;  %v273_v31 = vsel %vm59_vm2, 1.0, %v349_v30 }
  0x77   :  { %v125_v32 = vsel %vm80_vm1, %v104_v29, %v273_v31 }
  0x78   :  { %v94_v33 = vpop.permute.xlu2 %93  ;;  %v165_v34 = vsel %vm79_vm3, %v147_v22, %v125_v32 }
  0x79   :  { %282 = vmatmul.msk.f32.vlgmr.msra.gmra.mxu2 %vm172_vm4, %v165_v34 }
  0x7c   :  { %v51_v35 = vpop.permute.xlu0 %50 }
  0x7d   :  { %vm61_vm5 = vcmp.eq.s32.totalorder %v268_v27, %v51_v35 }
  0x7e   :  { %v114_v36 = vpop.permute.xlu1 %113  ;;  %v275_v37 = vsel %vm61_vm5, 1.0, %v349_v30 }
  0x7f   :  { %v127_v38 = vsel %vm80_vm1, %v114_v36, %v275_v37 }
  0x80   :  { %v109_v39 = vpop.permute.xlu2 %108  ;;  %v167_v40 = vsel %vm79_vm3, %v155_v23, %v127_v38 }
  0x81   :  { %284 = vmatmul.msk.f32.vlgmr.msra.gmra.mxu3 %vm172_vm4, %v167_v40  ;;  %v126_v44 = vsel %vm80_vm1, %v109_v39, %v274_v41 }
  0x84   :  { %v33_v42 = vpop.permute.xlu0 %32 }
  0x85   :  { %vm55_vm7 = vcmp.eq.s32.totalorder %v268_v27, %v33_v42 }
  0x86   :  { %v269_v51 = vsel %vm55_vm7, 1.0, %v349_v30 }
  0x87   :  { %v39_v43 = vpop.permute.xlu1 %38 }
  0x88   :  { %vm57_vm8 = vcmp.eq.s32.totalorder %v268_v27, %v39_v43 }
  0x89   :  { %v151_v45 = vpop.permute.xlu2 %150  ;;  %v271_v52 = vsel %vm57_vm8, 1.0, %v349_v30 }
  0x8a   :  { %v166_v46 = vsel %vm79_vm3, %v151_v45, %v126_v44  ;;  %v123_v56 = vsel %vm80_vm1, %v94_v33, %v271_v52 }
  0x8b   :  { %283 = vmatmul.msk.f32.gmra.mxu2 %vm172_vm4, %v166_v46 }
  0x8c   :  { %v54_v47 = vpop.permute.xlu0 %53 }
  0x8d   :  { %vm62_vm10 = vcmp.eq.s32.totalorder %v268_v27, %v54_v47 }
  0x8e   :  { %v276_v60 = vsel %vm62_vm10, 1.0, %v349_v30 }
  0x90   :  { %v84_v48 = vpop.permute.xlu1 %83 }
  0x91   :  { %v121_v53 = vsel %vm80_vm1, %v84_v48, %v269_v51 }
  0x92   :  { %v42_v49 = vpop.permute.xlu2 %41 }
  0x93   :  { %vm58_vm9 = vcmp.eq.s32.totalorder %v268_v27, %v42_v49 }
  0x94   :  { %v272_v50 = vsel %vm58_vm9, 1.0, %v349_v30 }
  0x95   :  { %v131_v54 = vpop.permute.xlu0 %130 }
  0x96   :  { %v161_v55 = vsel %vm79_vm3, %v131_v54, %v121_v53 }
  0x97   :  { %278 = vmatmul.msk.f32.vlgmr.msra.gmra.mxu0 %vm172_vm4, %v161_v55 }
  0x99   :  { %v139_v57 = vpop.permute.xlu1 %138 }
  0x9a   :  { %v163_v58 = vsel %vm79_vm3, %v139_v57, %v123_v56 }
  0x9b   :  { %280 = vmatmul.msk.f32.vlgmr.msra.gmra.mxu1 %vm172_vm4, %v163_v58  ;;  %v135_v2 = vpop.permute.xlu2 %134 }
  0x9d   :  { %v159_v59 = vpop.permute.xlu0 %158 }
  0xa2   :  { %v119_v61 = vpop.permute.xlu1 %118 }
  0xa3   :  { %v128_v62 = vsel %vm80_vm1, %v119_v61, %v276_v60 }
  0xa4   :  { %v168_v63 = vsel %vm79_vm3, %v159_v59, %v128_v62 }
  0xa5   :  { %285 = vmatmul.msk.f32.gmra.mxu3 %vm172_vm4, %v168_v63 }
  0xa6   :  { %v89_v1 = vpop.permute.xlu0 %88 }
  0xab   :  { %v36_v0 = vpop.permute.xlu1 %35 }
  0xac   :  { %vm56_vm11 = vcmp.eq.s32.totalorder %v268_v27, %v36_v0 }
  0xad   :  { %v270_v3 = vsel %vm56_vm11, 1.0, %v349_v30 }
  0xae   :  { %v122_v4 = vsel %vm80_vm1, %v89_v1, %v270_v3 }
  0xaf   :  { %v162_v5 = vsel %vm79_vm3, %v135_v2, %v122_v4 }
  0xb0   :  { %279 = vmatmul.msk.f32.gmra.mxu0 %vm172_vm4, %v162_v5 }
  0xb4   :  { %v99_v6 = vpop.permute.xlu1 %98 }
  0xb5   :  { %v124_v7 = vsel %vm80_vm1, %v99_v6, %v272_v50 }
  0xbd   :  { %v143_v8 = vpop.permute.xlu1 %142 }
  0xbe   :  { %v164_v9 = vsel %vm79_vm3, %v143_v8, %v124_v7 }
  0xbf   :  { %281 = vmatmul.msk.f32.gmra.mxu1 %vm172_vm4, %v164_v9 }
  0xfc   :  { %v230_v10 = vpop.f32.mrf.mxu2 }
  0xfd   :  { %246 = vst [vmem:[#allocation2 + $0x20] sm:$0xff] %v230_v10 }
 0x104   :  { %v236_v11 = vpop.f32.mrf.mxu3 }
 0x105   :  { %248 = vst [vmem:[#allocation2 + $0x30] sm:$0xff] %v236_v11 }
 0x10e   :  { %v233_v12 = vpop.f32.mrf.mxu2 }
 0x10f   :  { %247 = vst [vmem:[#allocation2 + $0x28] sm:$0xff] %v233_v12 }
 0x114   :  { %v218_v13 = vpop.f32.mrf.mxu0 }
 0x115   :  { %242 = vst [vmem:[#allocation2] sm:$0xff] %v218_v13 }
 0x118   :  { %v224_v14 = vpop.f32.mrf.mxu1 }
 0x119   :  { %244 = vst [vmem:[#allocation2 + $0x10] sm:$0xff] %v224_v14 }
 0x128   :  { %v239_v15 = vpop.f32.mrf.mxu3 }
 0x129   :  { %249 = vst [vmem:[#allocation2 + $0x38] sm:$0xff] %v239_v15 }
 0x12d   :  { %v221_v16 = vpop.f32.mrf.mxu0 }
 0x12e   :  { %243 = vst [vmem:[#allocation2 + $0x8] sm:$0xff] %v221_v16 }
 0x13c   :  { %v227_v17 = vpop.f32.mrf.mxu1 }
 0x13d   :  { %245 = vst [vmem:[#allocation2 + $0x18] sm:$0xff] %v227_v17 }
 0x13e   :  { %262 = dma.vmem_to_hbm [thread:$0]  %s255_s30, 1024, %s257_s5, [#allocation3], %s351_s6, %s351_s6, %s352_s7  }
 0x13f   :  { %344 = dma.done.wait [#allocation3], 1024  }
 0x140   :  { %345 = vsyncadd [#allocation3], 4294966272 }
 0x141   :  { %267 = vsyncpa [#allocation3], 1 }

</bundles_post_ra>
